<compile_context>
chip_gen: v6e
topology: v6e:2x2x1
jax: 0.10.0
libtpu: 0.0.40
codegen_flags: <defaults>
</compile_context>

<pallas_src>
import functools
import math

import jax
import jax.numpy as jnp
from jax.experimental import pallas as pl
from jax.experimental.pallas import tpu as pltpu

SUBLANE = 8          # f32 sublane tile (second-to-last dim)
_MIB = 1 << 20


def _round_up(n, m):
    return ((n + m - 1) // m) * m


# ----------------------------------------------------------------------------
# Fused MLP kernel: one kernel call runs every layer back-to-back in VMEM.
#   refs = (w0, b0, w1, b1, ..., w_{L-1}, b_{L-1}, o_ref)
# ----------------------------------------------------------------------------
def _fused_mlp_kernel(x_ref, *refs, num_layers):
    o_ref = refs[-1]
    h = x_ref[...].astype(jnp.float32)                    # (TB, d0)
    for i in range(num_layers):                           # unrolled at trace time
        w = refs[2 * i][...]                              # (d_i, d_{i+1}), resident (bf16 or f32)
        b = refs[2 * i + 1][...]                          # (1, d_{i+1}), resident, f32
        h = jnp.dot(h.astype(w.dtype), w,
                    preferred_element_type=jnp.float32)   # MXU, f32 accumulation
        h = h + b                                         # VPU bias add (f32)
        if i != num_layers - 1:
            h = jnp.maximum(h, 0.0)                       # VPU ReLU (f32); last layer = Identity
    o_ref[...] = h.astype(o_ref.dtype)


# ----------------------------------------------------------------------------
# One-time parameter preparation (hoisted out of the per-call path).
# ----------------------------------------------------------------------------
def prepare_params(params, compute_dtype=jnp.bfloat16):
    """Cast weights to the MXU compute dtype once; biases stay f32, shape (1, out)."""
    prepared = []
    for w, b in params:
        prepared.append((jnp.asarray(w, compute_dtype),
                         jnp.asarray(b, jnp.float32).reshape(1, -1)))
    return prepared


# ----------------------------------------------------------------------------
# Forward pass: a single fused pallas_call over a batch-tiled grid.
# ----------------------------------------------------------------------------
def mlp_forward_fused(x, prepared_params, *, batch_tile=512):
    B, in_dim = x.shape
    weights = [w for (w, _) in prepared_params]
    n_layers = len(weights)
    out_dim = weights[-1].shape[1]

    # Batch tile: multiple of 8 sublanes, grows with B, capped at batch_tile.
    TB = min(_round_up(B, SUBLANE), _round_up(batch_tile, SUBLANE))
    Bp = _round_up(B, TB)
    x_in = x if Bp == B else jnp.zeros((Bp, in_dim), x.dtype).at[:B].set(x)

    # VMEM budget: double-buffered in/out batch tiles + (possibly 2x-buffered)
    # resident params + live f32 intermediates; clamp to [32, 56] MiB so it is
    # valid on v5e/v6e (128 MiB physical) and v7x (64 MiB per TensorCore).
    param_bytes = sum(w.size * w.dtype.itemsize + b.size * b.dtype.itemsize
                      for (w, b) in prepared_params)
    max_feat = max([in_dim] + [w.shape[1] for w in weights])
    need = (2 * TB * (in_dim + out_dim) * 4      # double-buffered activation tiles
            + 2 * param_bytes                    # resident params (worst case 2 bufs)
            + 4 * TB * max_feat * 4)             # f32 intermediates / headroom
    vmem_limit = int(min(56 * _MIB, max(32 * _MIB, 2 * need)))

    flops = 2 * Bp * sum(w.shape[0] * w.shape[1] for w in weights)
    bytes_accessed = (x_in.size * x_in.dtype.itemsize
                      + Bp * out_dim * x.dtype.itemsize + param_bytes)

    def build_call(buffer_params_once):
        # x / out are tiled over the batch grid; weights & biases are
        # whole-array VMEM-resident blocks (constant index_map (0, 0)).
        in_specs = [pl.BlockSpec((TB, in_dim), lambda i: (i, 0),
                                 memory_space=pltpu.MemorySpace.VMEM)]
        for w, b in prepared_params:
            kw = dict(memory_space=pltpu.MemorySpace.VMEM)
            if buffer_params_once:
                kw["pipeline_mode"] = pl.Buffered(1)   # fetched once; no double buffer
            in_specs.append(pl.BlockSpec(w.shape, lambda i: (0, 0), **kw))
            in_specs.append(pl.BlockSpec(b.shape, lambda i: (0, 0), **kw))
        # True-width output (masked stores, but 8x fewer HBM bytes than lane
        # padding and no post-kernel lane slice).
        out_spec = pl.BlockSpec((TB, out_dim), lambda i: (i, 0),
                                memory_space=pltpu.MemorySpace.VMEM)
        return pl.pallas_call(
            functools.partial(_fused_mlp_kernel, num_layers=n_layers),
            out_shape=jax.ShapeDtypeStruct((Bp, out_dim), x.dtype),
            grid=(Bp // TB,),
            in_specs=in_specs,
            out_specs=out_spec,
            compiler_params=pltpu.CompilerParams(
                dimension_semantics=("parallel",),
                vmem_limit_bytes=vmem_limit),
            cost_estimate=pl.CostEstimate(flops=flops, transcendentals=0,
                                          bytes_accessed=bytes_accessed),
        )

    flat = []
    for w, b in prepared_params:
        flat += [w, b]

    try:
        out_p = build_call(True)(x_in, *flat)
    except Exception:
        # Fallback if this Pallas build rejects Buffered(1) on a grid-based
        # pallas_call BlockSpec; semantics are identical.
        out_p = build_call(False)(x_in, *flat)

    return out_p if Bp == B else out_p[:B]


# ----------------------------------------------------------------------------
# Parameter initialization (matches weights_init_: xavier_uniform weights,
# zero biases), deterministic via jax.random.
# ----------------------------------------------------------------------------
def xavier_uniform(key, fan_in, fan_out, dtype=jnp.float32):
    bound = math.sqrt(6.0 / (fan_in + fan_out))           # gain = 1
    return jax.random.uniform(key, (fan_in, fan_out), dtype, -bound, bound)


def init_mlp_params(key, input_dim, hidden_dims, output_dim, dtype=jnp.float32):
    dims = [input_dim] + list(hidden_dims) + [output_dim]
    params = []
    for i in range(len(dims) - 1):
        key, sub = jax.random.split(key)
        w = xavier_uniform(sub, dims[i], dims[i + 1], dtype)
        b = jnp.zeros((dims[i + 1],), dtype)
        params.append((w, b))
    return params


if __name__ == "__main__":
    # Small shapes consistent with the module: batch=8, input_dim=32,
    # hidden_dims=[64, 64], output_dim=16, output_act = Identity (default).
    batch, input_dim, hidden_dims, output_dim = 8, 32, [64, 64], 16

    key = jax.random.PRNGKey(0)
    key_x, key_p = jax.random.split(key)

    x = jax.random.normal(key_x, (batch, input_dim), jnp.float32)
    params = init_mlp_params(key_p, input_dim, hidden_dims, output_dim)

    # Reference in plain JAX (same math, f32 end to end).
    ref = x
    for i, (w, b) in enumerate(params):
        ref = ref @ w + b.reshape(1, -1)
        if i != len(params) - 1:
            ref = jnp.maximum(ref, 0.0)

    # Default fast path: bf16 weights on the MXU, f32 accumulation.
    out_bf16 = mlp_forward_fused(x, prepare_params(params, jnp.bfloat16))
    jax.block_until_ready(out_bf16)
    assert out_bf16.shape == (batch, output_dim)
    assert jnp.allclose(out_bf16, ref, atol=5e-2, rtol=5e-2)   # bf16 rounding only

    # f32 path for a tight numerical check of the kernel structure.
    out_f32 = mlp_forward_fused(x, prepare_params(params, jnp.float32))
    jax.block_until_ready(out_f32)
    assert out_f32.shape == (batch, output_dim)
    assert jnp.allclose(out_f32, ref, atol=1e-5, rtol=1e-5)

    print("KERNEL_OK")
</pallas_src>

<mosaic_0001>
module attributes {stable_mosaic.version = 11 : i64} {
  func.func @_fused_mlp_kernel(%arg0: i32, %arg1: memref<8x32xf32, #tpu.memory_space<vmem>>, %arg2: memref<32x64xbf16, #tpu.memory_space<vmem>>, %arg3: memref<1x64xf32, #tpu.memory_space<vmem>>, %arg4: memref<64x64xbf16, #tpu.memory_space<vmem>>, %arg5: memref<1x64xf32, #tpu.memory_space<vmem>>, %arg6: memref<64x16xbf16, #tpu.memory_space<vmem>>, %arg7: memref<1x16xf32, #tpu.memory_space<vmem>>, %arg8: memref<8x16xf32, #tpu.memory_space<vmem>>) attributes {dimension_semantics = [#tpu.dimension_semantics<parallel>], iteration_bounds = array<i64: 1>, scalar_prefetch = 0 : i64, scratch_operands = 0 : i64, tpu.core_type = #tpu.core_type<tc>, window_params = [{transform_indices = @transform_0, window_bounds = array<i64: 8, 32>}, {pipeline_mode = #tpu.pipeline_mode<synchronous>, transform_indices = @transform_1, window_bounds = array<i64: 32, 64>}, {pipeline_mode = #tpu.pipeline_mode<synchronous>, transform_indices = @transform_2, window_bounds = array<i64: 1, 64>}, {pipeline_mode = #tpu.pipeline_mode<synchronous>, transform_indices = @transform_3, window_bounds = array<i64: 64, 64>}, {pipeline_mode = #tpu.pipeline_mode<synchronous>, transform_indices = @transform_4, window_bounds = array<i64: 1, 64>}, {pipeline_mode = #tpu.pipeline_mode<synchronous>, transform_indices = @transform_5, window_bounds = array<i64: 64, 16>}, {pipeline_mode = #tpu.pipeline_mode<synchronous>, transform_indices = @transform_6, window_bounds = array<i64: 1, 16>}, {transform_indices = @transform_7, window_bounds = array<i64: 8, 16>}]} {
    %c0 = arith.constant 0 : index
    %c0_0 = arith.constant 0 : index
    %0 = vector.load %arg1[%c0, %c0_0] : memref<8x32xf32, #tpu.memory_space<vmem>>, vector<8x32xf32>
    %c0_1 = arith.constant 0 : index
    %c0_2 = arith.constant 0 : index
    %1 = vector.load %arg2[%c0_1, %c0_2] : memref<32x64xbf16, #tpu.memory_space<vmem>>, vector<32x64xbf16>
    %c0_3 = arith.constant 0 : index
    %c0_4 = arith.constant 0 : index
    %2 = vector.load %arg3[%c0_3, %c0_4] : memref<1x64xf32, #tpu.memory_space<vmem>>, vector<1x64xf32>
    %3 = arith.truncf %0 : vector<8x32xf32> to vector<8x32xbf16>
    %cst = arith.constant dense<0.000000e+00> : vector<8x64xf32>
    %4 = tpu.matmul %3, %1, %cst {dimension_numbers = #tpu.dot_dimension_numbers<[1], [0], [0], [1], [0, 0, 1, 1], [], []>} : vector<8x32xbf16>, vector<32x64xbf16>, vector<8x64xf32> -> vector<8x64xf32>
    %5 = vector.broadcast %2 : vector<1x64xf32> to vector<8x64xf32>
    %6 = arith.addf %4, %5 : vector<8x64xf32>
    %cst_5 = arith.constant 0.000000e+00 : f32
    %7 = vector.broadcast %cst_5 : f32 to vector<8x64xf32>
    %8 = arith.maximumf %6, %7 : vector<8x64xf32>
    %c0_6 = arith.constant 0 : index
    %c0_7 = arith.constant 0 : index
    %9 = vector.load %arg4[%c0_6, %c0_7] : memref<64x64xbf16, #tpu.memory_space<vmem>>, vector<64x64xbf16>
    %c0_8 = arith.constant 0 : index
    %c0_9 = arith.constant 0 : index
    %10 = vector.load %arg5[%c0_8, %c0_9] : memref<1x64xf32, #tpu.memory_space<vmem>>, vector<1x64xf32>
    %11 = arith.truncf %8 : vector<8x64xf32> to vector<8x64xbf16>
    %cst_10 = arith.constant dense<0.000000e+00> : vector<8x64xf32>
    %12 = tpu.matmul %11, %9, %cst_10 {dimension_numbers = #tpu.dot_dimension_numbers<[1], [0], [0], [1], [0, 0, 1, 1], [], []>} : vector<8x64xbf16>, vector<64x64xbf16>, vector<8x64xf32> -> vector<8x64xf32>
    %13 = vector.broadcast %10 : vector<1x64xf32> to vector<8x64xf32>
    %14 = arith.addf %12, %13 : vector<8x64xf32>
    %cst_11 = arith.constant 0.000000e+00 : f32
    %15 = vector.broadcast %cst_11 : f32 to vector<8x64xf32>
    %16 = arith.maximumf %14, %15 : vector<8x64xf32>
    %c0_12 = arith.constant 0 : index
    %c0_13 = arith.constant 0 : index
    %17 = vector.load %arg6[%c0_12, %c0_13] : memref<64x16xbf16, #tpu.memory_space<vmem>>, vector<64x16xbf16>
    %c0_14 = arith.constant 0 : index
    %c0_15 = arith.constant 0 : index
    %18 = vector.load %arg7[%c0_14, %c0_15] : memref<1x16xf32, #tpu.memory_space<vmem>>, vector<1x16xf32>
    %19 = arith.truncf %16 : vector<8x64xf32> to vector<8x64xbf16>
    %cst_16 = arith.constant dense<0.000000e+00> : vector<8x16xf32>
    %20 = tpu.matmul %19, %17, %cst_16 {dimension_numbers = #tpu.dot_dimension_numbers<[1], [0], [0], [1], [0, 0, 1, 1], [], []>} : vector<8x64xbf16>, vector<64x16xbf16>, vector<8x16xf32> -> vector<8x16xf32>
    %21 = vector.broadcast %18 : vector<1x16xf32> to vector<8x16xf32>
    %22 = arith.addf %20, %21 : vector<8x16xf32>
    %c0_17 = arith.constant 0 : index
    %c0_18 = arith.constant 0 : index
    %23 = vector.load %arg8[%c0_17, %c0_18] : memref<8x16xf32, #tpu.memory_space<vmem>>, vector<8x16xf32>
    tpu.vector_store %arg8[%c0_17, %c0_18], %22 {strides = array<i32>} : memref<8x16xf32, #tpu.memory_space<vmem>>, vector<8x16xf32>,
    return
  }
  func.func @transform_0(%arg0: i32) -> (i32, i32) {
    %c0_i32 = arith.constant 0 : i32
    %c0_i32_0 = arith.constant 0 : i32
    return %arg0, %c0_i32 : i32, i32
  }
  func.func @transform_1(%arg0: i32) -> (i32, i32) {
    %c0_i32 = arith.constant 0 : i32
    %c0_i32_0 = arith.constant 0 : i32
    %c0_i32_1 = arith.constant 0 : i32
    return %c0_i32, %c0_i32_0 : i32, i32
  }
  func.func @transform_2(%arg0: i32) -> (i32, i32) {
    %c0_i32 = arith.constant 0 : i32
    %c0_i32_0 = arith.constant 0 : i32
    %c0_i32_1 = arith.constant 0 : i32
    return %c0_i32, %c0_i32_0 : i32, i32
  }
  func.func @transform_3(%arg0: i32) -> (i32, i32) {
    %c0_i32 = arith.constant 0 : i32
    %c0_i32_0 = arith.constant 0 : i32
    %c0_i32_1 = arith.constant 0 : i32
    return %c0_i32, %c0_i32_0 : i32, i32
  }
  func.func @transform_4(%arg0: i32) -> (i32, i32) {
    %c0_i32 = arith.constant 0 : i32
    %c0_i32_0 = arith.constant 0 : i32
    %c0_i32_1 = arith.constant 0 : i32
    return %c0_i32, %c0_i32_0 : i32, i32
  }
  func.func @transform_5(%arg0: i32) -> (i32, i32) {
    %c0_i32 = arith.constant 0 : i32
    %c0_i32_0 = arith.constant 0 : i32
    %c0_i32_1 = arith.constant 0 : i32
    return %c0_i32, %c0_i32_0 : i32, i32
  }
  func.func @transform_6(%arg0: i32) -> (i32, i32) {
    %c0_i32 = arith.constant 0 : i32
    %c0_i32_0 = arith.constant 0 : i32
    %c0_i32_1 = arith.constant 0 : i32
    return %c0_i32, %c0_i32_0 : i32, i32
  }
  func.func @transform_7(%arg0: i32) -> (i32, i32) {
    %c0_i32 = arith.constant 0 : i32
    %c0_i32_0 = arith.constant 0 : i32
    return %arg0, %c0_i32 : i32, i32
  }
}

module attributes {stable_mosaic.version = 11 : i64} {
  func.func @_fused_mlp_kernel(%arg0: i32, %arg1: memref<8x32xf32, #tpu.memory_space<vmem>>, %arg2: memref<32x64xbf16, #tpu.memory_space<vmem>>, %arg3: memref<1x64xf32, #tpu.memory_space<vmem>>, %arg4: memref<64x64xbf16, #tpu.memory_space<vmem>>, %arg5: memref<1x64xf32, #tpu.memory_space<vmem>>, %arg6: memref<64x16xbf16, #tpu.memory_space<vmem>>, %arg7: memref<1x16xf32, #tpu.memory_space<vmem>>, %arg8: memref<8x16xf32, #tpu.memory_space<vmem>>) attributes {dimension_semantics = [#tpu.dimension_semantics<parallel>], iteration_bounds = array<i64: 1>, scalar_prefetch = 0 : i64, scratch_operands = 0 : i64, tpu.core_type = #tpu.core_type<tc>, window_params = [{transform_indices = @transform_0, window_bounds = array<i64: 8, 32>}, {pipeline_mode = #tpu.pipeline_mode<synchronous>, transform_indices = @transform_1, window_bounds = array<i64: 32, 64>}, {pipeline_mode = #tpu.pipeline_mode<synchronous>, transform_indices = @transform_2, window_bounds = array<i64: 1, 64>}, {pipeline_mode = #tpu.pipeline_mode<synchronous>, transform_indices = @transform_3, window_bounds = array<i64: 64, 64>}, {pipeline_mode = #tpu.pipeline_mode<synchronous>, transform_indices = @transform_4, window_bounds = array<i64: 1, 64>}, {pipeline_mode = #tpu.pipeline_mode<synchronous>, transform_indices = @transform_5, window_bounds = array<i64: 64, 16>}, {pipeline_mode = #tpu.pipeline_mode<synchronous>, transform_indices = @transform_6, window_bounds = array<i64: 1, 16>}, {transform_indices = @transform_7, window_bounds = array<i64: 8, 16>}]} {
    %c0 = arith.constant 0 : index
    %c0_0 = arith.constant 0 : index
    %0 = vector.load %arg1[%c0, %c0_0] : memref<8x32xf32, #tpu.memory_space<vmem>>, vector<8x32xf32>
    %c0_1 = arith.constant 0 : index
    %c0_2 = arith.constant 0 : index
    %1 = vector.load %arg2[%c0_1, %c0_2] : memref<32x64xbf16, #tpu.memory_space<vmem>>, vector<32x64xbf16>
    %c0_3 = arith.constant 0 : index
    %c0_4 = arith.constant 0 : index
    %2 = vector.load %arg3[%c0_3, %c0_4] : memref<1x64xf32, #tpu.memory_space<vmem>>, vector<1x64xf32>
    %3 = arith.truncf %0 : vector<8x32xf32> to vector<8x32xbf16>
    %cst = arith.constant dense<0.000000e+00> : vector<8x64xf32>
    %4 = tpu.matmul %3, %1, %cst {dimension_numbers = #tpu.dot_dimension_numbers<[1], [0], [0], [1], [0, 0, 1, 1], [], []>} : vector<8x32xbf16>, vector<32x64xbf16>, vector<8x64xf32> -> vector<8x64xf32>
    %5 = vector.broadcast %2 : vector<1x64xf32> to vector<8x64xf32>
    %6 = arith.addf %4, %5 : vector<8x64xf32>
    %cst_5 = arith.constant 0.000000e+00 : f32
    %7 = vector.broadcast %cst_5 : f32 to vector<8x64xf32>
    %8 = arith.maximumf %6, %7 : vector<8x64xf32>
    %c0_6 = arith.constant 0 : index
    %c0_7 = arith.constant 0 : index
    %9 = vector.load %arg4[%c0_6, %c0_7] : memref<64x64xbf16, #tpu.memory_space<vmem>>, vector<64x64xbf16>
    %c0_8 = arith.constant 0 : index
    %c0_9 = arith.constant 0 : index
    %10 = vector.load %arg5[%c0_8, %c0_9] : memref<1x64xf32, #tpu.memory_space<vmem>>, vector<1x64xf32>
    %11 = arith.truncf %8 : vector<8x64xf32> to vector<8x64xbf16>
    %cst_10 = arith.constant dense<0.000000e+00> : vector<8x64xf32>
    %12 = tpu.matmul %11, %9, %cst_10 {dimension_numbers = #tpu.dot_dimension_numbers<[1], [0], [0], [1], [0, 0, 1, 1], [], []>} : vector<8x64xbf16>, vector<64x64xbf16>, vector<8x64xf32> -> vector<8x64xf32>
    %13 = vector.broadcast %10 : vector<1x64xf32> to vector<8x64xf32>
    %14 = arith.addf %12, %13 : vector<8x64xf32>
    %cst_11 = arith.constant 0.000000e+00 : f32
    %15 = vector.broadcast %cst_11 : f32 to vector<8x64xf32>
    %16 = arith.maximumf %14, %15 : vector<8x64xf32>
    %c0_12 = arith.constant 0 : index
    %c0_13 = arith.constant 0 : index
    %17 = vector.load %arg6[%c0_12, %c0_13] : memref<64x16xbf16, #tpu.memory_space<vmem>>, vector<64x16xbf16>
    %c0_14 = arith.constant 0 : index
    %c0_15 = arith.constant 0 : index
    %18 = vector.load %arg7[%c0_14, %c0_15] : memref<1x16xf32, #tpu.memory_space<vmem>>, vector<1x16xf32>
    %19 = arith.truncf %16 : vector<8x64xf32> to vector<8x64xbf16>
    %cst_16 = arith.constant dense<0.000000e+00> : vector<8x16xf32>
    %20 = tpu.matmul %19, %17, %cst_16 {dimension_numbers = #tpu.dot_dimension_numbers<[1], [0], [0], [1], [0, 0, 1, 1], [], []>} : vector<8x64xbf16>, vector<64x16xbf16>, vector<8x16xf32> -> vector<8x16xf32>
    %21 = vector.broadcast %18 : vector<1x16xf32> to vector<8x16xf32>
    %22 = arith.addf %20, %21 : vector<8x16xf32>
    %c0_17 = arith.constant 0 : index
    %c0_18 = arith.constant 0 : index
    %23 = vector.load %arg8[%c0_17, %c0_18] : memref<8x16xf32, #tpu.memory_space<vmem>>, vector<8x16xf32>
    tpu.vector_store %arg8[%c0_17, %c0_18], %22 {strides = array<i32>} : memref<8x16xf32, #tpu.memory_space<vmem>>, vector<8x16xf32>,
    return
  }
  func.func @transform_0(%arg0: i32) -> (i32, i32) {
    %c0_i32 = arith.constant 0 : i32
    %c0_i32_0 = arith.constant 0 : i32
    return %arg0, %c0_i32 : i32, i32
  }
  func.func @transform_1(%arg0: i32) -> (i32, i32) {
    %c0_i32 = arith.constant 0 : i32
    %c0_i32_0 = arith.constant 0 : i32
    %c0_i32_1 = arith.constant 0 : i32
    return %c0_i32, %c0_i32_0 : i32, i32
  }
  func.func @transform_2(%arg0: i32) -> (i32, i32) {
    %c0_i32 = arith.constant 0 : i32
    %c0_i32_0 = arith.constant 0 : i32
    %c0_i32_1 = arith.constant 0 : i32
    return %c0_i32, %c0_i32_0 : i32, i32
  }
  func.func @transform_3(%arg0: i32) -> (i32, i32) {
    %c0_i32 = arith.constant 0 : i32
    %c0_i32_0 = arith.constant 0 : i32
    %c0_i32_1 = arith.constant 0 : i32
    return %c0_i32, %c0_i32_0 : i32, i32
  }
  func.func @transform_4(%arg0: i32) -> (i32, i32) {
    %c0_i32 = arith.constant 0 : i32
    %c0_i32_0 = arith.constant 0 : i32
    %c0_i32_1 = arith.constant 0 : i32
    return %c0_i32, %c0_i32_0 : i32, i32
  }
  func.func @transform_5(%arg0: i32) -> (i32, i32) {
    %c0_i32 = arith.constant 0 : i32
    %c0_i32_0 = arith.constant 0 : i32
    %c0_i32_1 = arith.constant 0 : i32
    return %c0_i32, %c0_i32_0 : i32, i32
  }
  func.func @transform_6(%arg0: i32) -> (i32, i32) {
    %c0_i32 = arith.constant 0 : i32
    %c0_i32_0 = arith.constant 0 : i32
    %c0_i32_1 = arith.constant 0 : i32
    return %c0_i32, %c0_i32_0 : i32, i32
  }
  func.func @transform_7(%arg0: i32) -> (i32, i32) {
    %c0_i32 = arith.constant 0 : i32
    %c0_i32_0 = arith.constant 0 : i32
    return %arg0, %c0_i32 : i32, i32
  }
}

</mosaic_0001>

<bundles_post_ra>
// kernel: tpu_custom_call.1
= control target key start
LH: loop header
LB: loop body
LE: loop exit
PB: predicated region body
PF: predicated region fallthrough
CT: control target
= control target key end

     0   :  { %12 = vsyncpa [#allocation3], 0  ;;  %s548_s0 = inlined_call_operand.vmem [shape: f32[8,32], index: 0, kind: input, shape index: {}]   ;;  %s549_s1 = inlined_call_operand.hbm [shape: bf16[32,64], index: 1, kind: input, shape index: {}]   ;;  %s550_s2 = inlined_call_operand.vmem [shape: f32[1,64], index: 2, kind: input, shape index: {}]   ;;  %s551_s3 = inlined_call_operand.vmem [shape: bf16[64,64], index: 3, kind: input, shape index: {}]   ;;  %s552_s4 = inlined_call_operand.hbm [shape: f32[1,64], index: 4, kind: input, shape index: {}]   ;;  %s553_s5 = inlined_call_operand.vmem [shape: bf16[64,16], index: 5, kind: input, shape index: {}]   ;;  %s554_s6 = inlined_call_operand.vmem [shape: f32[1,16], index: 6, kind: input, shape index: {}]   ;;  %s555_s7 = inlined_call_operand.hbm [shape: f32[8,16], index: 7, kind: output, shape index: {}]  }
   0x1   :  { %13 = vsyncpa [#allocation6], 0 }
   0x2   :  { %14 = vsyncpa [#allocation4], 0  ;;  %s454_s24 = smov [#allocation2]  }
   0x3   :  { %s22_s25 = sshll.u32 %s454_s24, 4  ;;  %s23_s25 = int_to_ptr.vmem [resolvable:$true] %s22_s25 }
   0x4   :  { %s396_s26 = scalar_lea.vmem %s23_s25, 256  ;;  %p401_p1 = scmp.lt.s32.totalorder %s23_s25, %s23_s25 }
   0x5   :  { %p397_p0 = scmp.ne.s32.totalorder %s23_s25, %s396_s26  ;;  %p402_p2 = scmp.lt.s32.totalorder %s396_s26, %s396_s26 }
   0x7   :  { %p403_p3 = por %p402_p2, %p401_p1 }
   0x9   :  { %p404_p4 = pnand %p403_p3, %p397_p0 }
   0xb   :  { %407 = shalt.err (!%p404_p4)
}
   0xc   :  { %s455_s27 = smov 64   ;;  %s456_s28 = smov 4  }
   0xd   :  { %28 = dma.hbm_to_vmem [thread:$0]  %s549_s1, 256, %s23_s25, [#allocation3], %s455_s27, %s455_s27, %s456_s28  }
   0xe   :  { %s457_s8 = smov [#allocation5]  }
   0xf   :  { %s39_s9 = sshll.u32 %s457_s8, 4  ;;  %s40_s9 = int_to_ptr.vmem [resolvable:$true] %s39_s9 }
  0x10   :  { %s416_s10 = scalar_lea.vmem %s40_s9, 16  ;;  %s420_s11 = scalar_lea.vmem %s40_s9, 32 }
  0x11   :  { %p417_p5 = scmp.ne.s32.totalorder %s40_s9, %s416_s10  ;;  %p421_p6 = scmp.lt.s32.totalorder %s40_s9, %s40_s9 }
  0x12   :  { %p422_p7 = scmp.lt.s32.totalorder %s420_s11, %s416_s10 }
  0x14   :  { %p423_p8 = por %p422_p7, %p421_p6 }
  0x16   :  { %p424_p9 = pnand %p423_p8, %p417_p5 }
  0x18   :  { %427 = shalt.err (!%p424_p9)
}
  0x19   :  { %42 = dma.hbm_to_vmem [thread:$0]  %s552_s4, 16, %s40_s9, [#allocation6]  }
  0x1a   :  { %448 = dma.done.wait [#allocation3], 256  }
  0x1b   :  { %449 = vsyncadd [#allocation3], 4294967040 }
  0x1c   :  { %450 = dma.done.wait [#allocation6], 16  }
  0x1d   :  { %451 = vsyncadd [#allocation6], 4294967280  ;;  %v458_v0 = vmov 0.0   ;;  %vm459_vm0 = vmmov 0   ;;  %v378_v1 = vld [vmem:[#allocation2 + $0x8] sm:$0xff]   ;;  %v379_v2 = vld [vmem:[#allocation2] sm:$0xff]  }
  0x1e   :  { %339 = vmatprep.subr.bf16.mxu0 %v458_v0  ;;  %343 = vmatprep.mubr.msk.bf16.mxu0 %vm459_vm0, %v458_v0  ;;  %v54_v3 = vld [vmem:[%s548_s0] sm:$0xff]  ;;  %v380_v4 = vld [vmem:[%s551_s3 + $0x18] sm:$0xff]   ;;  %vm79_vm1 = vcmask 261120   ;;  %v381_v5 = vld [vmem:[%s551_s3 + $0x10] sm:$0xff]   ;;  %vm164_vm2 = vcmask 523264   ;;  %s460_s8 = smov [#allocation7]  }
  0x1f   :  { %347 = vmatprep.subr.bf16.mxu1 %v458_v0  ;;  %355 = vmatprep.mubr.msk.bf16.mxu1 %vm459_vm0, %v458_v0  ;;  %v60_v6 = vpack.c.bf16 %v54_v3, %v54_v3  ;;  %v382_v7 = vld [vmem:[%s551_s3 + $0x8] sm:$0xff]   ;;  %v383_v8 = vld [vmem:[%s551_s3] sm:$0xff]   ;;  %v384_v9 = vld [vmem:[%s553_s5 + $0x18] sm:$0xff]   ;;  %s300_s9 = sshll.u32 %s460_s8, 4  ;;  %vm292_vm3 = vcmask 130048   ;;  %s301_s9 = int_to_ptr.vmem [resolvable:$true] %s300_s9 }
  0x20   :  { %340 = vmatpush3.bf16.msra.mxu0 %v378_v1  ;;  %348 = vmatpush3.bf16.msra.mxu1 %v380_v4  ;;  %v385_v10 = vld [vmem:[%s553_s5 + $0x10] sm:$0xff]   ;;  %v310_v11 = vld [vmem:[%s550_s2] ss:$0 sm:$0xff]  ;;  %v386_v19 = vld [vmem:[%s553_s5 + $0x8] sm:$0xff]   ;;  %p433_p11 = scmp.lt.s32.totalorder %s301_s9, %s301_s9 }
  0x21   :  { %341 = vmatprep.subr.bf16.mxu0 %v458_v0  ;;  %349 = vmatprep.subr.bf16.mxu1 %v458_v0  ;;  %v387_v20 = vld [vmem:[%s553_s5] sm:$0xff]   ;;  %v314_v21 = vld [vmem:[#allocation5] ss:$0 sm:$0xff]  ;;  %s428_s5 = scalar_lea.vmem %s301_s9, 128 }
  0x22   :  { %v320_v29 = vld [vmem:[%s554_s6] ss:$0 sm:$0xff]  ;;  %p429_p10 = scmp.ne.s32.totalorder %s301_s9, %s428_s5  ;;  %p434_p12 = scmp.lt.s32.totalorder %s428_s5, %s428_s5 }
  0x24   :  { %342 = vmatpush3.bf16.msra.mxu0 %v379_v2  ;;  %350 = vmatpush3.bf16.msra.mxu1 %v381_v5  ;;  %p435_p13 = por %p434_p12, %p433_p11 }
  0x25   :  { %359 = vmatprep.subr.bf16.mxu0 %v458_v0  ;;  %351 = vmatprep.subr.bf16.mxu1 %v458_v0 }
  0x26   :  { %p436_p0 = pnand %p435_p13, %p429_p10 }
  0x27   :  { %344 = vmatmul.mubr.msk.bf16.vlgmr.msra.gmra.mxu0 %vm79_vm1, %v60_v6 }
  0x28   :  { %367 = vmatprep.mubr.msk.bf16.mxu0 %vm459_vm0, %v458_v0  ;;  %352 = vmatpush3.bf16.msra.mxu1 %v382_v7 }
  0x29   :  { %353 = vmatprep.subr.bf16.mxu1 %v458_v0  ;;  %360 = vmatpush3.bf16.msra.mxu0 %v384_v9 }
  0x2a   :  { %361 = vmatprep.subr.bf16.mxu0 %v458_v0 }
  0x2c   :  { %354 = vmatpush3.bf16.msra.mxu1 %v383_v8 }
  0x2d   :  { %362 = vmatpush3.bf16.msra.mxu0 %v385_v10 }
  0x2e   :  { %363 = vmatprep.subr.bf16.mxu0 %v458_v0 }
  0x31   :  { %364 = vmatpush3.bf16.msra.mxu0 %v386_v19 }
  0x32   :  { %365 = vmatprep.subr.bf16.mxu0 %v458_v0 }
  0x35   :  { %366 = vmatpush3.bf16.msra.mxu0 %v387_v20 }
  0xe7   :  { %v117_v12 = vpop.f32.mrf.mxu0 }
  0xe8   :  { %v118_v13 = vadd.f32 %v310_v11, %v117_v12 }
  0xe9   :  { %v345_v14 = vpop.f32.mrf.mxu0 }
  0xea   :  { %v123_v15 = vmax.f32 %v118_v13, 0.0 }
  0xeb   :  { %v120_v16 = vpop.f32.mrf.mxu0 }
  0xec   :  { %v133_v17 = vpack.c.bf16 %v123_v15, %v123_v15 }
  0xed   :  { %v346_v18 = vpop.f32.mrf.mxu0 }
  0xee   :  { %356 = vmatmul.mubr.msk.bf16.vlgmr.msra.gmra.mxu1 %vm164_vm2, %v133_v17 }
 0x1ae   :  { %v202_v22 = vpop.f32.mrf.mxu1 }
 0x1af   :  { %v203_v23 = vadd.f32 %v314_v21, %v202_v22 }
 0x1b0   :  { %v357_v24 = vpop.f32.mrf.mxu1 }
 0x1b1   :  { %v208_v25 = vmax.f32 %v203_v23, 0.0 }
 0x1b2   :  { %v205_v26 = vpop.f32.mrf.mxu1 }
 0x1b3   :  { %v218_v27 = vpack.c.bf16 %v208_v25, %v208_v25 }
 0x1b4   :  { %v358_v28 = vpop.f32.mrf.mxu1 }
 0x1b5   :  { %368 = vmatmul.mubr.msk.bf16.vlgmr.msra.gmra.mxu0 %vm164_vm2, %v218_v27 }
 0x275   :  { %v286_v30 = vpop.f32.mrf.mxu0 }
 0x276   :  { %v287_v31 = vadd.f32 %v320_v29, %v286_v30 }
 0x277   :  { %v369_v32 = vpop.f32.mrf.mxu0 }
 0x278   :  { %293 = vst.msk [vmem:[#allocation7] sm:$0xff] %vm292_vm3, %v287_v31 }
 0x279   :  { %v289_v33 = vpop.f32.mrf.mxu0 }
 0x27a   :  { %439 = shalt.err (!%p436_p0)
}
 0x27b   :  { %303 = dma.vmem_to_hbm [thread:$0]  %s301_s9, 128, %s555_s7, [#allocation4]   ;;  %v370_v34 = vpop.f32.mrf.mxu0 }
 0x27c   :  { %452 = dma.done.wait [#allocation4], 128  }
 0x27d   :  { %453 = vsyncadd [#allocation4], 4294967168 }
 0x27e   :  { %307 = vsyncpa [#allocation3], 1 }
 0x27f   :  { %308 = vsyncpa [#allocation6], 1 }
 0x280   :  { %309 = vsyncpa [#allocation4], 1 }

// kernel: tpu_custom_call.1
= control target key start
LH: loop header
LB: loop body
LE: loop exit
PB: predicated region body
PF: predicated region fallthrough
CT: control target
= control target key end

     0   :  { %12 = vsyncpa [#allocation3], 0  ;;  %s548_s0 = inlined_call_operand.vmem [shape: f32[8,32], index: 0, kind: input, shape index: {}]   ;;  %s549_s1 = inlined_call_operand.hbm [shape: bf16[32,64], index: 1, kind: input, shape index: {}]   ;;  %s550_s2 = inlined_call_operand.vmem [shape: f32[1,64], index: 2, kind: input, shape index: {}]   ;;  %s551_s3 = inlined_call_operand.vmem [shape: bf16[64,64], index: 3, kind: input, shape index: {}]   ;;  %s552_s4 = inlined_call_operand.hbm [shape: f32[1,64], index: 4, kind: input, shape index: {}]   ;;  %s553_s5 = inlined_call_operand.vmem [shape: bf16[64,16], index: 5, kind: input, shape index: {}]   ;;  %s554_s6 = inlined_call_operand.vmem [shape: f32[1,16], index: 6, kind: input, shape index: {}]   ;;  %s555_s7 = inlined_call_operand.hbm [shape: f32[8,16], index: 7, kind: output, shape index: {}]  }
   0x1   :  { %13 = vsyncpa [#allocation6], 0 }
   0x2   :  { %14 = vsyncpa [#allocation4], 0  ;;  %s454_s24 = smov [#allocation2]  }
   0x3   :  { %s22_s25 = sshll.u32 %s454_s24, 4  ;;  %s23_s25 = int_to_ptr.vmem [resolvable:$true] %s22_s25 }
   0x4   :  { %s396_s26 = scalar_lea.vmem %s23_s25, 256  ;;  %p401_p1 = scmp.lt.s32.totalorder %s23_s25, %s23_s25 }
   0x5   :  { %p397_p0 = scmp.ne.s32.totalorder %s23_s25, %s396_s26  ;;  %p402_p2 = scmp.lt.s32.totalorder %s396_s26, %s396_s26 }
   0x7   :  { %p403_p3 = por %p402_p2, %p401_p1 }
   0x9   :  { %p404_p4 = pnand %p403_p3, %p397_p0 }
   0xb   :  { %407 = shalt.err (!%p404_p4)
}
   0xc   :  { %s455_s27 = smov 64   ;;  %s456_s28 = smov 4  }
   0xd   :  { %28 = dma.hbm_to_vmem [thread:$0]  %s549_s1, 256, %s23_s25, [#allocation3], %s455_s27, %s455_s27, %s456_s28  }
   0xe   :  { %s457_s8 = smov [#allocation5]  }
   0xf   :  { %s39_s9 = sshll.u32 %s457_s8, 4  ;;  %s40_s9 = int_to_ptr.vmem [resolvable:$true] %s39_s9 }
  0x10   :  { %s416_s10 = scalar_lea.vmem %s40_s9, 16  ;;  %s420_s11 = scalar_lea.vmem %s40_s9, 32 }
  0x11   :  { %p417_p5 = scmp.ne.s32.totalorder %s40_s9, %s416_s10  ;;  %p421_p6 = scmp.lt.s32.totalorder %s40_s9, %s40_s9 }
  0x12   :  { %p422_p7 = scmp.lt.s32.totalorder %s420_s11, %s416_s10 }
  0x14   :  { %p423_p8 = por %p422_p7, %p421_p6 }
  0x16   :  { %p424_p9 = pnand %p423_p8, %p417_p5 }
  0x18   :  { %427 = shalt.err (!%p424_p9)
}
  0x19   :  { %42 = dma.hbm_to_vmem [thread:$0]  %s552_s4, 16, %s40_s9, [#allocation6]  }
  0x1a   :  { %448 = dma.done.wait [#allocation3], 256  }
  0x1b   :  { %449 = vsyncadd [#allocation3], 4294967040 }
  0x1c   :  { %450 = dma.done.wait [#allocation6], 16  }
  0x1d   :  { %451 = vsyncadd [#allocation6], 4294967280  ;;  %v458_v0 = vmov 0.0   ;;  %vm459_vm0 = vmmov 0   ;;  %v378_v1 = vld [vmem:[#allocation2 + $0x8] sm:$0xff]   ;;  %v379_v2 = vld [vmem:[#allocation2] sm:$0xff]  }
  0x1e   :  { %339 = vmatprep.subr.bf16.mxu0 %v458_v0  ;;  %343 = vmatprep.mubr.msk.bf16.mxu0 %vm459_vm0, %v458_v0  ;;  %v54_v3 = vld [vmem:[%s548_s0] sm:$0xff]  ;;  %v380_v4 = vld [vmem:[%s551_s3 + $0x18] sm:$0xff]   ;;  %vm79_vm1 = vcmask 261120   ;;  %v381_v5 = vld [vmem:[%s551_s3 + $0x10] sm:$0xff]   ;;  %vm164_vm2 = vcmask 523264   ;;  %s460_s8 = smov [#allocation7]  }
  0x1f   :  { %347 = vmatprep.subr.bf16.mxu1 %v458_v0  ;;  %355 = vmatprep.mubr.msk.bf16.mxu1 %vm459_vm0, %v458_v0  ;;  %v60_v6 = vpack.c.bf16 %v54_v3, %v54_v3  ;;  %v382_v7 = vld [vmem:[%s551_s3 + $0x8] sm:$0xff]   ;;  %v383_v8 = vld [vmem:[%s551_s3] sm:$0xff]   ;;  %v384_v9 = vld [vmem:[%s553_s5 + $0x18] sm:$0xff]   ;;  %s300_s9 = sshll.u32 %s460_s8, 4  ;;  %vm292_vm3 = vcmask 130048   ;;  %s301_s9 = int_to_ptr.vmem [resolvable:$true] %s300_s9 }
  0x20   :  { %340 = vmatpush3.bf16.msra.mxu0 %v378_v1  ;;  %348 = vmatpush3.bf16.msra.mxu1 %v380_v4  ;;  %v385_v10 = vld [vmem:[%s553_s5 + $0x10] sm:$0xff]   ;;  %v310_v11 = vld [vmem:[%s550_s2] ss:$0 sm:$0xff]  ;;  %v386_v19 = vld [vmem:[%s553_s5 + $0x8] sm:$0xff]   ;;  %p433_p11 = scmp.lt.s32.totalorder %s301_s9, %s301_s9 }
  0x21   :  { %341 = vmatprep.subr.bf16.mxu0 %v458_v0  ;;  %349 = vmatprep.subr.bf16.mxu1 %v458_v0  ;;  %v387_v20 = vld [vmem:[%s553_s5] sm:$0xff]   ;;  %v314_v21 = vld [vmem:[#allocation5] ss:$0 sm:$0xff]  ;;  %s428_s5 = scalar_lea.vmem %s301_s9, 128 }
  0x22   :  { %v320_v29 = vld [vmem:[%s554_s6] ss:$0 sm:$0xff]  ;;  %p429_p10 = scmp.ne.s32.totalorder %s301_s9, %s428_s5  ;;  %p434_p12 = scmp.lt.s32.totalorder %s428_s5, %s428_s5 }
  0x24   :  { %342 = vmatpush3.bf16.msra.mxu0 %v379_v2  ;;  %350 = vmatpush3.bf16.msra.mxu1 %v381_v5  ;;  %p435_p13 = por %p434_p12, %p433_p11 }
  0x25   :  { %359 = vmatprep.subr.bf16.mxu0 %v458_v0  ;;  %351 = vmatprep.subr.bf16.mxu1 %v458_v0 }
  0x26   :  { %p436_p0 = pnand %p435_p13, %p429_p10 }
  0x27   :  { %344 = vmatmul.mubr.msk.bf16.vlgmr.msra.gmra.mxu0 %vm79_vm1, %v60_v6 }
  0x28   :  { %367 = vmatprep.mubr.msk.bf16.mxu0 %vm459_vm0, %v458_v0  ;;  %352 = vmatpush3.bf16.msra.mxu1 %v382_v7 }
  0x29   :  { %353 = vmatprep.subr.bf16.mxu1 %v458_v0  ;;  %360 = vmatpush3.bf16.msra.mxu0 %v384_v9 }
  0x2a   :  { %361 = vmatprep.subr.bf16.mxu0 %v458_v0 }
  0x2c   :  { %354 = vmatpush3.bf16.msra.mxu1 %v383_v8 }
  0x2d   :  { %362 = vmatpush3.bf16.msra.mxu0 %v385_v10 }
  0x2e   :  { %363 = vmatprep.subr.bf16.mxu0 %v458_v0 }
  0x31   :  { %364 = vmatpush3.bf16.msra.mxu0 %v386_v19 }
  0x32   :  { %365 = vmatprep.subr.bf16.mxu0 %v458_v0 }
  0x35   :  { %366 = vmatpush3.bf16.msra.mxu0 %v387_v20 }
  0xe7   :  { %v117_v12 = vpop.f32.mrf.mxu0 }
  0xe8   :  { %v118_v13 = vadd.f32 %v310_v11, %v117_v12 }
  0xe9   :  { %v345_v14 = vpop.f32.mrf.mxu0 }
  0xea   :  { %v123_v15 = vmax.f32 %v118_v13, 0.0 }
  0xeb   :  { %v120_v16 = vpop.f32.mrf.mxu0 }
  0xec   :  { %v133_v17 = vpack.c.bf16 %v123_v15, %v123_v15 }
  0xed   :  { %v346_v18 = vpop.f32.mrf.mxu0 }
  0xee   :  { %356 = vmatmul.mubr.msk.bf16.vlgmr.msra.gmra.mxu1 %vm164_vm2, %v133_v17 }
 0x1ae   :  { %v202_v22 = vpop.f32.mrf.mxu1 }
 0x1af   :  { %v203_v23 = vadd.f32 %v314_v21, %v202_v22 }
 0x1b0   :  { %v357_v24 = vpop.f32.mrf.mxu1 }
 0x1b1   :  { %v208_v25 = vmax.f32 %v203_v23, 0.0 }
 0x1b2   :  { %v205_v26 = vpop.f32.mrf.mxu1 }
 0x1b3   :  { %v218_v27 = vpack.c.bf16 %v208_v25, %v208_v25 }
 0x1b4   :  { %v358_v28 = vpop.f32.mrf.mxu1 }
 0x1b5   :  { %368 = vmatmul.mubr.msk.bf16.vlgmr.msra.gmra.mxu0 %vm164_vm2, %v218_v27 }
 0x275   :  { %v286_v30 = vpop.f32.mrf.mxu0 }
 0x276   :  { %v287_v31 = vadd.f32 %v320_v29, %v286_v30 }
 0x277   :  { %v369_v32 = vpop.f32.mrf.mxu0 }
 0x278   :  { %293 = vst.msk [vmem:[#allocation7] sm:$0xff] %vm292_vm3, %v287_v31 }
 0x279   :  { %v289_v33 = vpop.f32.mrf.mxu0 }
 0x27a   :  { %439 = shalt.err (!%p436_p0)
}
 0x27b   :  { %303 = dma.vmem_to_hbm [thread:$0]  %s301_s9, 128, %s555_s7, [#allocation4]   ;;  %v370_v34 = vpop.f32.mrf.mxu0 }
 0x27c   :  { %452 = dma.done.wait [#allocation4], 128  }
 0x27d   :  { %453 = vsyncadd [#allocation4], 4294967168 }
 0x27e   :  { %307 = vsyncpa [#allocation3], 1 }
 0x27f   :  { %308 = vsyncpa [#allocation6], 1 }
 0x280   :  { %309 = vsyncpa [#allocation4], 1 }

</bundles_post_ra>
